<compile_context>
chip_gen: v6e
topology: v6e:2x2x1
jax: 0.10.0
libtpu: 0.0.40
codegen_flags: <defaults>
</compile_context>

<pallas_src>
import jax
import jax.numpy as jnp
from jax.experimental import pallas as pl
from jax.experimental.pallas import tpu as pltpu


def _res_graph_conv_kernel(x_ref, adjd1_ref, adjo1_ref, w1_ref, b1_ref,
                           adjd2_ref, adjo2_ref, w2_ref, b2_ref, o_ref):
    x2 = x_ref[...].astype(jnp.float32)          # (J, bb*Cin) lane-dense slab

    def layer(h, adjd, adjo, wblk, bias):
        n = wblk.shape[-1] // 2                  # bb*c_out
        # fused feature transform: ONE lane-dense MXU matmul against the
        # block-diagonal [I_bb (x) W0 | I_bb (x) W1] weight (BN scale folded)
        hcat = jnp.dot(h, wblk, preferred_element_type=jnp.float32)  # (J, 2*n)
        h0 = hcat[:, :n]                         # lane-aligned contiguous slice
        h1 = hcat[:, n:]
        # self-loop term (A*I)@h0 == diag(A)[j]*h0[j]  -> per-joint VPU scale
        out = adjd * h0
        # neighbour term: single (J,J) @ (J, bb*c_out) lane-dense MXU matmul
        out = out + jnp.dot(adjo, h1, preferred_element_type=jnp.float32)
        # BatchNorm already folded into wblk / bias; just bias + ReLU
        return jnp.maximum(out + bias, 0.0)

    h = layer(x2, adjd1_ref[...], adjo1_ref[...], w1_ref[...], b1_ref[...])
    h = layer(h, adjd2_ref[...], adjo2_ref[...], w2_ref[...], b2_ref[...])

    # residual add in the lane-dense layout -> unmasked full-width stores
    o_ref[...] = (x2 + h).astype(o_ref.dtype)


def _pick_batch_block(batch, dims, target=8):
    """Largest batch block <= target dividing B that keeps all flattened lane
    dims (bb*Cin, bb*H, bb*Cout) multiples of 128 (unmasked stores, lane-dense
    layouts). Falls back to a block where only the I/O dims are lane-dense,
    then to the whole batch (full-array blocks are always legal)."""
    fallback = None
    for bb in range(min(batch, target), 0, -1):
        if batch % bb:
            continue
        if all((bb * d) % 128 == 0 for d in dims):
            return bb
        if (fallback is None and (bb * dims[0]) % 128 == 0
                and (bb * dims[-1]) % 128 == 0):
            fallback = bb
    return fallback if fallback is not None else batch


@jax.jit
def res_graph_conv(x, adj1, w1, b1, bn1, adj2, w2, b2, bn2):
    B, J, Cin = x.shape
    H = w1.shape[-1]
    Cout = w2.shape[-1]
    assert Cin == Cout, "residual block requires input_dim == output_dim"

    bb = _pick_batch_block(B, (Cin, H, Cout))
    grid = (B // bb,)

    def fold(adj_logits, w, b, bn):
        # adjacency softmax is batch independent -> precompute diag/off-diag
        adj = jax.nn.softmax(adj_logits, axis=1)
        adj_diag = jnp.diagonal(adj).reshape(-1, 1)                      # (J, 1)
        adj_off = adj * (1.0 - jnp.eye(adj.shape[0], dtype=adj.dtype))   # (J, J)
        # fold eval-mode BatchNorm into the graph-conv weights / bias
        gamma, beta, rmean, rvar = bn[0], bn[1], bn[2], bn[3]
        s = gamma * jax.lax.rsqrt(rvar + 1e-5)                           # (c_out,)
        w0s, w1s = w[0] * s, w[1] * s                                    # (c_in, c_out)
        eye_bb = jnp.eye(bb, dtype=w.dtype)
        # block-diagonal [I (x) W0 | I (x) W1]: maps the joint-major slab
        # (J, bb*c_in) straight to (J, 2*bb*c_out) -> zero in-kernel reshapes
        wblk = jnp.concatenate(
            [jnp.kron(eye_bb, w0s), jnp.kron(eye_bb, w1s)], axis=-1)
        bfold = ((b.reshape(-1) - rmean) * s + beta).reshape(1, -1)      # (1, c_out)
        bslab = jnp.tile(bfold, (1, bb))                                 # (1, bb*c_out)
        return adj_diag, adj_off, wblk, bslab

    ad1, ao1, w1k, b1s = fold(adj1, w1, b1, bn1)
    ad2, ao2, w2k, b2s = fold(adj2, w2, b2, bn2)

    # joint-major, lane-dense activation slab: (J, B*Cin)
    xt2d = jnp.transpose(x, (1, 0, 2)).reshape(J, B * Cin)

    out2d = pl.pallas_call(
        _res_graph_conv_kernel,
        out_shape=jax.ShapeDtypeStruct((J, B * Cout), x.dtype),
        grid=grid,
        in_specs=[
            pl.BlockSpec((J, bb * Cin), lambda i: (0, i)),           # x, batch-tiled
            pl.BlockSpec((J, 1), lambda i: (0, 0)),                  # adj_diag, layer 1
            pl.BlockSpec((J, J), lambda i: (0, 0)),                  # adj_off,  layer 1
            pl.BlockSpec((bb * Cin, 2 * bb * H), lambda i: (0, 0)),  # blockdiag W, layer 1
            pl.BlockSpec((1, bb * H), lambda i: (0, 0)),             # folded bias, layer 1
            pl.BlockSpec((J, 1), lambda i: (0, 0)),                  # adj_diag, layer 2
            pl.BlockSpec((J, J), lambda i: (0, 0)),                  # adj_off,  layer 2
            pl.BlockSpec((bb * H, 2 * bb * Cout), lambda i: (0, 0)), # blockdiag W, layer 2
            pl.BlockSpec((1, bb * Cout), lambda i: (0, 0)),          # folded bias, layer 2
        ],
        out_specs=pl.BlockSpec((J, bb * Cout), lambda i: (0, i)),
        compiler_params=pltpu.CompilerParams(
            dimension_semantics=("parallel",)),
    )(xt2d, ad1, ao1, w1k, b1s, ad2, ao2, w2k, b2s)

    return out2d.reshape(J, B, Cout).transpose(1, 0, 2)


def _reference(x, adj1, w1, b1, bn1, adj2, w2, b2, bn2):
    """Pure-JAX reference matching the PyTorch eval-mode forward (unfused)."""
    def layer(h, adj_logits, w, b, bn):
        adj = jax.nn.softmax(adj_logits, axis=1)
        eye = jnp.eye(adj.shape[0], dtype=adj.dtype)
        h0 = jnp.einsum('bjc,cd->bjd', h, w[0])
        h1 = jnp.einsum('bjc,cd->bjd', h, w[1])
        out = (jnp.einsum('jk,bkd->bjd', adj * eye, h0) +
               jnp.einsum('jk,bkd->bjd', adj * (1.0 - eye), h1)) + b
        gamma, beta, rmean, rvar = bn[0], bn[1], bn[2], bn[3]
        out = (out - rmean) / jnp.sqrt(rvar + 1e-5) * gamma + beta
        return jax.nn.relu(out)

    o = layer(x, adj1, w1, b1, bn1)
    o = layer(o, adj2, w2, b2, bn2)
    return x + o


def _make_adj_logits(key, J):
    """Ring graph + self loops; learned e at edge positions, -9e15 elsewhere."""
    idx = jnp.arange(J)
    mask = jnp.zeros((J, J), dtype=bool)
    mask = mask.at[idx, idx].set(True)
    mask = mask.at[idx, (idx + 1) % J].set(True)
    mask = mask.at[idx, (idx - 1) % J].set(True)
    e_dense = 1.0 + 0.1 * jax.random.normal(key, (J, J), dtype=jnp.float32)
    return jnp.where(mask, e_dense, jnp.float32(-9e15))


def _make_bn_params(key, C):
    k1, k2, k3, k4 = jax.random.split(key, 4)
    gamma = 1.0 + 0.1 * jax.random.normal(k1, (C,), dtype=jnp.float32)
    beta = 0.1 * jax.random.normal(k2, (C,), dtype=jnp.float32)
    rmean = 0.1 * jax.random.normal(k3, (C,), dtype=jnp.float32)
    rvar = jax.random.uniform(k4, (C,), minval=0.5, maxval=1.5, dtype=jnp.float32)
    return jnp.stack([gamma, beta, rmean, rvar], axis=0)       # (4, C)


if __name__ == "__main__":
    B, J = 16, 16           # batch of poses, joints
    Cin = Cout = 16         # residual requires input_dim == output_dim
    H = 32                  # hid_dim

    key = jax.random.PRNGKey(0)
    ks = jax.random.split(key, 10)

    x = jax.random.normal(ks[0], (B, J, Cin), dtype=jnp.float32)

    # layer 1: SemGraphConv(Cin -> H) + BN(H)
    adj1 = _make_adj_logits(ks[1], J)
    w1 = (jax.random.normal(ks[2], (2, Cin, H), dtype=jnp.float32)
          * (1.414 * (6.0 / (Cin + H)) ** 0.5))
    b1 = jax.random.uniform(ks[3], (1, H), minval=-1.0 / H ** 0.5,
                            maxval=1.0 / H ** 0.5, dtype=jnp.float32)
    bn1 = _make_bn_params(ks[4], H)

    # layer 2: SemGraphConv(H -> Cout) + BN(Cout)
    adj2 = _make_adj_logits(ks[5], J)
    w2 = (jax.random.normal(ks[6], (2, H, Cout), dtype=jnp.float32)
          * (1.414 * (6.0 / (H + Cout)) ** 0.5))
    b2 = jax.random.uniform(ks[7], (1, Cout), minval=-1.0 / Cout ** 0.5,
                            maxval=1.0 / Cout ** 0.5, dtype=jnp.float32)
    bn2 = _make_bn_params(ks[8], Cout)

    out = res_graph_conv(x, adj1, w1, b1, bn1, adj2, w2, b2, bn2)
    out = jax.block_until_ready(out)

    ref = _reference(x, adj1, w1, b1, bn1, adj2, w2, b2, bn2)
    assert out.shape == (B, J, Cout), out.shape
    assert jnp.allclose(out, ref, rtol=1e-4, atol=1e-4), float(
        jnp.max(jnp.abs(out - ref)))

    print("KERNEL_OK")
</pallas_src>

<mosaic_0001>
module attributes {stable_mosaic.version = 11 : i64} {
  func.func @_res_graph_conv_kernel(%arg0: i32, %arg1: memref<16x128xf32, #tpu.memory_space<vmem>>, %arg2: memref<16x1xf32, #tpu.memory_space<vmem>>, %arg3: memref<16x16xf32, #tpu.memory_space<vmem>>, %arg4: memref<128x512xf32, #tpu.memory_space<vmem>>, %arg5: memref<1x256xf32, #tpu.memory_space<vmem>>, %arg6: memref<16x1xf32, #tpu.memory_space<vmem>>, %arg7: memref<16x16xf32, #tpu.memory_space<vmem>>, %arg8: memref<256x256xf32, #tpu.memory_space<vmem>>, %arg9: memref<1x128xf32, #tpu.memory_space<vmem>>, %arg10: memref<16x128xf32, #tpu.memory_space<vmem>>) attributes {dimension_semantics = [#tpu.dimension_semantics<parallel>], iteration_bounds = array<i64: 2>, scalar_prefetch = 0 : i64, scratch_operands = 0 : i64, tpu.core_type = #tpu.core_type<tc>, window_params = [{transform_indices = @transform_0, window_bounds = array<i64: 16, 128>}, {pipeline_mode = #tpu.pipeline_mode<synchronous>, transform_indices = @transform_1, window_bounds = array<i64: 16, 1>}, {pipeline_mode = #tpu.pipeline_mode<synchronous>, transform_indices = @transform_2, window_bounds = array<i64: 16, 16>}, {pipeline_mode = #tpu.pipeline_mode<synchronous>, transform_indices = @transform_3, window_bounds = array<i64: 128, 512>}, {pipeline_mode = #tpu.pipeline_mode<synchronous>, transform_indices = @transform_4, window_bounds = array<i64: 1, 256>}, {pipeline_mode = #tpu.pipeline_mode<synchronous>, transform_indices = @transform_5, window_bounds = array<i64: 16, 1>}, {pipeline_mode = #tpu.pipeline_mode<synchronous>, transform_indices = @transform_6, window_bounds = array<i64: 16, 16>}, {pipeline_mode = #tpu.pipeline_mode<synchronous>, transform_indices = @transform_7, window_bounds = array<i64: 256, 256>}, {pipeline_mode = #tpu.pipeline_mode<synchronous>, transform_indices = @transform_8, window_bounds = array<i64: 1, 128>}, {transform_indices = @transform_9, window_bounds = array<i64: 16, 128>}]} {
    %c0 = arith.constant 0 : index
    %c0_0 = arith.constant 0 : index
    %0 = vector.load %arg1[%c0, %c0_0] : memref<16x128xf32, #tpu.memory_space<vmem>>, vector<16x128xf32>
    %c0_1 = arith.constant 0 : index
    %c0_2 = arith.constant 0 : index
    %1 = vector.load %arg2[%c0_1, %c0_2] : memref<16x1xf32, #tpu.memory_space<vmem>>, vector<16x1xf32>
    %c0_3 = arith.constant 0 : index
    %c0_4 = arith.constant 0 : index
    %2 = vector.load %arg3[%c0_3, %c0_4] : memref<16x16xf32, #tpu.memory_space<vmem>>, vector<16x16xf32>
    %c0_5 = arith.constant 0 : index
    %c0_6 = arith.constant 0 : index
    %3 = vector.load %arg4[%c0_5, %c0_6] : memref<128x512xf32, #tpu.memory_space<vmem>>, vector<128x512xf32>
    %c0_7 = arith.constant 0 : index
    %c0_8 = arith.constant 0 : index
    %4 = vector.load %arg5[%c0_7, %c0_8] : memref<1x256xf32, #tpu.memory_space<vmem>>, vector<1x256xf32>
    %cst = arith.constant dense<0.000000e+00> : vector<16x512xf32>
    %5 = tpu.matmul %0, %3, %cst {dimension_numbers = #tpu.dot_dimension_numbers<[1], [0], [0], [1], [0, 0, 1, 1], [], []>} : vector<16x128xf32>, vector<128x512xf32>, vector<16x512xf32> -> vector<16x512xf32>
    %6 = vector.extract_strided_slice %5 {offsets = [0, 0], sizes = [16, 256], strides = [1, 1]} : vector<16x512xf32> to vector<16x256xf32>
    %7 = vector.extract_strided_slice %5 {offsets = [0, 256], sizes = [16, 256], strides = [1, 1]} : vector<16x512xf32> to vector<16x256xf32>
    %8 = vector.broadcast %1 : vector<16x1xf32> to vector<16x256xf32>
    %9 = arith.mulf %8, %6 : vector<16x256xf32>
    %cst_9 = arith.constant dense<0.000000e+00> : vector<16x256xf32>
    %10 = tpu.matmul %2, %7, %cst_9 {dimension_numbers = #tpu.dot_dimension_numbers<[1], [0], [0], [1], [0, 0, 1, 1], [], []>} : vector<16x16xf32>, vector<16x256xf32>, vector<16x256xf32> -> vector<16x256xf32>
    %11 = arith.addf %9, %10 : vector<16x256xf32>
    %12 = vector.broadcast %4 : vector<1x256xf32> to vector<16x256xf32>
    %13 = arith.addf %11, %12 : vector<16x256xf32>
    %cst_10 = arith.constant 0.000000e+00 : f32
    %14 = vector.broadcast %cst_10 : f32 to vector<16x256xf32>
    %15 = arith.maximumf %13, %14 : vector<16x256xf32>
    %c0_11 = arith.constant 0 : index
    %c0_12 = arith.constant 0 : index
    %16 = vector.load %arg6[%c0_11, %c0_12] : memref<16x1xf32, #tpu.memory_space<vmem>>, vector<16x1xf32>
    %c0_13 = arith.constant 0 : index
    %c0_14 = arith.constant 0 : index
    %17 = vector.load %arg7[%c0_13, %c0_14] : memref<16x16xf32, #tpu.memory_space<vmem>>, vector<16x16xf32>
    %c0_15 = arith.constant 0 : index
    %c0_16 = arith.constant 0 : index
    %18 = vector.load %arg8[%c0_15, %c0_16] : memref<256x256xf32, #tpu.memory_space<vmem>>, vector<256x256xf32>
    %c0_17 = arith.constant 0 : index
    %c0_18 = arith.constant 0 : index
    %19 = vector.load %arg9[%c0_17, %c0_18] : memref<1x128xf32, #tpu.memory_space<vmem>>, vector<1x128xf32>
    %cst_19 = arith.constant dense<0.000000e+00> : vector<16x256xf32>
    %20 = tpu.matmul %15, %18, %cst_19 {dimension_numbers = #tpu.dot_dimension_numbers<[1], [0], [0], [1], [0, 0, 1, 1], [], []>} : vector<16x256xf32>, vector<256x256xf32>, vector<16x256xf32> -> vector<16x256xf32>
    %21 = vector.extract_strided_slice %20 {offsets = [0, 0], sizes = [16, 128], strides = [1, 1]} : vector<16x256xf32> to vector<16x128xf32>
    %22 = vector.extract_strided_slice %20 {offsets = [0, 128], sizes = [16, 128], strides = [1, 1]} : vector<16x256xf32> to vector<16x128xf32>
    %23 = vector.broadcast %16 : vector<16x1xf32> to vector<16x128xf32>
    %24 = arith.mulf %23, %21 : vector<16x128xf32>
    %cst_20 = arith.constant dense<0.000000e+00> : vector<16x128xf32>
    %25 = tpu.matmul %17, %22, %cst_20 {dimension_numbers = #tpu.dot_dimension_numbers<[1], [0], [0], [1], [0, 0, 1, 1], [], []>} : vector<16x16xf32>, vector<16x128xf32>, vector<16x128xf32> -> vector<16x128xf32>
    %26 = arith.addf %24, %25 : vector<16x128xf32>
    %27 = vector.broadcast %19 : vector<1x128xf32> to vector<16x128xf32>
    %28 = arith.addf %26, %27 : vector<16x128xf32>
    %cst_21 = arith.constant 0.000000e+00 : f32
    %29 = vector.broadcast %cst_21 : f32 to vector<16x128xf32>
    %30 = arith.maximumf %28, %29 : vector<16x128xf32>
    %31 = arith.addf %0, %30 : vector<16x128xf32>
    %c0_22 = arith.constant 0 : index
    %c0_23 = arith.constant 0 : index
    %32 = vector.load %arg10[%c0_22, %c0_23] : memref<16x128xf32, #tpu.memory_space<vmem>>, vector<16x128xf32>
    tpu.vector_store %arg10[%c0_22, %c0_23], %31 {strides = array<i32>} : memref<16x128xf32, #tpu.memory_space<vmem>>, vector<16x128xf32>,
    return
  }
  func.func @transform_0(%arg0: i32) -> (i32, i32) {
    %c0_i32 = arith.constant 0 : i32
    %c0_i32_0 = arith.constant 0 : i32
    return %c0_i32, %arg0 : i32, i32
  }
  func.func @transform_1(%arg0: i32) -> (i32, i32) {
    %c0_i32 = arith.constant 0 : i32
    %c0_i32_0 = arith.constant 0 : i32
    %c0_i32_1 = arith.constant 0 : i32
    return %c0_i32, %c0_i32_0 : i32, i32
  }
  func.func @transform_2(%arg0: i32) -> (i32, i32) {
    %c0_i32 = arith.constant 0 : i32
    %c0_i32_0 = arith.constant 0 : i32
    %c0_i32_1 = arith.constant 0 : i32
    return %c0_i32, %c0_i32_0 : i32, i32
  }
  func.func @transform_3(%arg0: i32) -> (i32, i32) {
    %c0_i32 = arith.constant 0 : i32
    %c0_i32_0 = arith.constant 0 : i32
    %c0_i32_1 = arith.constant 0 : i32
    return %c0_i32, %c0_i32_0 : i32, i32
  }
  func.func @transform_4(%arg0: i32) -> (i32, i32) {
    %c0_i32 = arith.constant 0 : i32
    %c0_i32_0 = arith.constant 0 : i32
    %c0_i32_1 = arith.constant 0 : i32
    return %c0_i32, %c0_i32_0 : i32, i32
  }
  func.func @transform_5(%arg0: i32) -> (i32, i32) {
    %c0_i32 = arith.constant 0 : i32
    %c0_i32_0 = arith.constant 0 : i32
    %c0_i32_1 = arith.constant 0 : i32
    return %c0_i32, %c0_i32_0 : i32, i32
  }
  func.func @transform_6(%arg0: i32) -> (i32, i32) {
    %c0_i32 = arith.constant 0 : i32
    %c0_i32_0 = arith.constant 0 : i32
    %c0_i32_1 = arith.constant 0 : i32
    return %c0_i32, %c0_i32_0 : i32, i32
  }
  func.func @transform_7(%arg0: i32) -> (i32, i32) {
    %c0_i32 = arith.constant 0 : i32
    %c0_i32_0 = arith.constant 0 : i32
    %c0_i32_1 = arith.constant 0 : i32
    return %c0_i32, %c0_i32_0 : i32, i32
  }
  func.func @transform_8(%arg0: i32) -> (i32, i32) {
    %c0_i32 = arith.constant 0 : i32
    %c0_i32_0 = arith.constant 0 : i32
    %c0_i32_1 = arith.constant 0 : i32
    return %c0_i32, %c0_i32_0 : i32, i32
  }
  func.func @transform_9(%arg0: i32) -> (i32, i32) {
    %c0_i32 = arith.constant 0 : i32
    %c0_i32_0 = arith.constant 0 : i32
    return %c0_i32, %arg0 : i32, i32
  }
}

</mosaic_0001>

<bundles_post_ra>
// kernel: res_graph_conv.1
= control target key start
LH: loop header
LB: loop body
LE: loop exit
PB: predicated region body
PF: predicated region fallthrough
CT: control target
= control target key end

     0   :  { %s1202_s30 = smov 0   ;;  %s1204_s10 = smov 0   ;;  %s1712_s0 = inlined_call_operand.vmem [shape: f32[16,256], index: 0, kind: input, shape index: {}]   ;;  %s1713_s1 = inlined_call_operand.vmem [shape: f32[16,1], index: 1, kind: input, shape index: {}]   ;;  %s1714_s2 = inlined_call_operand.vmem [shape: f32[16,16], index: 2, kind: input, shape index: {}]   ;;  %s1715_s3 = inlined_call_operand.vmem [shape: f32[128,512], index: 3, kind: input, shape index: {}]   ;;  %s1716_s4 = inlined_call_operand.vmem [shape: f32[1,256], index: 4, kind: input, shape index: {}]   ;;  %s1717_s5 = inlined_call_operand.vmem [shape: f32[16,1], index: 5, kind: input, shape index: {}]   ;;  %s1718_s6 = inlined_call_operand.vmem [shape: f32[16,16], index: 6, kind: input, shape index: {}]   ;;  %s1719_s7 = inlined_call_operand.vmem [shape: f32[256,256], index: 7, kind: input, shape index: {}]   ;;  %s1720_s8 = inlined_call_operand.vmem [shape: f32[1,128], index: 8, kind: input, shape index: {}]   ;;  %s1721_s9 = inlined_call_operand.vmem [shape: f32[16,256], index: 9, kind: output, shape index: {}]  }
   0x1   :  { %s1206_s11 = smov 0  }
   0x2 LB: > { %s1069_s12 = sadd.s32 4294967295, %s1148_s11   ;;  %s1219_s13 = sadd.s32 1, %s1148_s11   ;;  %s1148_s11 = sphi %s1206_s11, %s1725_s11   ;;  %s1144_s10 = sphi %s1204_s10, %s1724_s10   ;;  %s1140_s30 = sphi %s1202_s30, %s1723_s30  }
   0x3   : > { %s23_s14 = ssub.s32 %s1148_s11, %s1219_s13  ;;  %s26_s15 = sadd.s32 1, %s1144_s10 }
   0x4   : > { %p24_p0 = scmp.eq.s32.totalorder %s23_s14, 0  ;;  %p33_p1 = scmp.ne.s32.totalorder %s1144_s10, %s1140_s30 }
   0x5   : > { %p34_p2 = scmp.eq.s32.totalorder %s1148_s11, 0  ;;  %p231_p3 = scmp.eq.s32.totalorder %s1069_s12, 1 }
   0x6   : > { %s1230_s16 = scalar_select %p24_p0, %s1144_s10, %s26_s15  }
   0x7   : > { %p35_p4 = por %p34_p2, %p33_p1  ;;  %p1232_p5 = por %p231_p3, %p33_p1 }
   0x8   : > { %p1072_p6 = scmp.ge.s32.totalorder %s1148_s11, 2 }
   0xa   : > { %277 = sbr.rel (%p1072_p6) target bundleno = 20 (0x14), region = 48 }
   0xf   : > { %280 = sbr.rel (!%p35_p4) target bundleno = 20 (0x14), region = 52  ;;  %s282_s18 = sand.u32 (%p35_p4), 1, %s1144_s10  }
  0x10   : > { %s1074_s19 = sshll.u32 (%p35_p4), %s1148_s11, 3  ;;  %s1073_s20 = sshll.u32 (%p35_p4), %s282_s18, 4 }
  0x11   : > { %s286_s23 = scalar_lea.vmem (%p35_p4), %s1712_s0, %s1074_s19  ;;  %s284_s24 = scalar_lea.vmem (%p35_p4), [#allocation2], %s1073_s20 }
  0x12   : > { %v317_v0 = vld [vmem:[%s286_s23] sm:$0xff] (%p35_p4)  ;;  %v319_v1 = vld [vmem:[%s286_s23 + $0x10] sm:$0xff] (%p35_p4) }
  0x13   : > { %318 = vst [vmem:[%s284_s24] sm:$0xff] (%p35_p4), %v317_v0  ;;  %320 = vst [vmem:[%s284_s24 + $0x8] sm:$0xff] (%p35_p4), %v319_v1 }
  0x14 PF: > { %p1075_p7 = scmp.ge.s32.totalorder %s1148_s11, 1  ;;  %p325_p8 = scmp.lt.s32.totalorder %s1148_s11, 3 }
  0x16   : > { %p326_p9 = pnand %p1075_p7, %p325_p8 }
  0x17   : > { %s332_s15 = sand.u32 (!%p326_p9), 1, %s1140_s30  }
  0x18   : > { %329 = sbr.rel (%p326_p9) target bundleno = 914 (0x392), region = 90  ;;  %s1331_s30 = sshll.u32 (!%p326_p9), %s332_s15, 4 }
  0x19   : > { %s334_s24 = scalar_lea.vmem (!%p326_p9), [#allocation2], %s1331_s30  ;;  %s365_s23 = scalar_lea.vmem (!%p326_p9), [#allocation3], %s1331_s30 }
  0x1d   : > { %v433_v2 = vld [vmem:[%s1715_s3 + $0x1e8] sm:$0xff]  ;;  %v432_v3 = vld [vmem:[%s1715_s3 + $0x1e0] sm:$0xff]  ;;  %v1150_v6 = vmov 0.0   ;;  %v1151_v8 = vmov 0   ;;  %v435_v39 = vld [vmem:[%s1715_s3 + $0x1f8] sm:$0xff]  ;;  %vm605_vm0 = vcmask 130048  }
  0x1e   : > { %v429_v4 = vld [vmem:[%s1715_s3 + $0x1c8] sm:$0xff]  ;;  %437 = vmatprep.subr.mxu0 %v433_v2  ;;  %v428_v5 = vld [vmem:[%s1715_s3 + $0x1c0] sm:$0xff]  ;;  %501 = vmatprep.mubr.f32.mxu0 %v1150_v6  ;;  %v434_v40 = vld [vmem:[%s1715_s3 + $0x1f0] sm:$0xff]  ;;  %s1084_s25 = sshll.u32 (%p1232_p5), %s1069_s12, 3 }
  0x1f   : > { %438 = vmatpush1.msra.mxu0 %v432_v3  ;;  %v425_v7 = vld [vmem:[%s1715_s3 + $0x1a8] sm:$0xff]  ;;  %1124 = vset.pattern.permute.xlu0 %v1151_v8  ;;  %v424_v9 = vld [vmem:[%s1715_s3 + $0x1a0] sm:$0xff]  ;;  %v431_v41 = vld [vmem:[%s1715_s3 + $0x1d8] sm:$0xff] }
  0x20   : > { %439 = vmatprep.subr.mxu0 %v429_v4  ;;  %676 = vmatprep.mubr.f32.mxu1 %v1150_v6  ;;  %v421_v10 = vld [vmem:[%s1715_s3 + $0x188] sm:$0xff]  ;;  %v420_v11 = vld [vmem:[%s1715_s3 + $0x180] sm:$0xff]  ;;  %v430_v42 = vld [vmem:[%s1715_s3 + $0x1d0] sm:$0xff] }
  0x21   : > { %440 = vmatpush1.msra.mxu0 %v428_v5  ;;  %1125 = vset.pattern.permute.xlu1 %v1151_v8  ;;  %v417_v12 = vld [vmem:[%s1715_s3 + $0x168] sm:$0xff]  ;;  %v416_v13 = vld [vmem:[%s1715_s3 + $0x160] sm:$0xff]  ;;  %v427_v43 = vld [vmem:[%s1715_s3 + $0x1b8] sm:$0xff] }
  0x22   : > { %441 = vmatprep.subr.mxu0 %v425_v7  ;;  %v413_v14 = vld [vmem:[%s1715_s3 + $0x148] sm:$0xff]  ;;  %v412_v15 = vld [vmem:[%s1715_s3 + $0x140] sm:$0xff]  ;;  %v426_v45 = vld [vmem:[%s1715_s3 + $0x1b0] sm:$0xff] }
  0x23   : > { %442 = vmatpush1.msra.mxu0 %v424_v9  ;;  %v409_v16 = vld [vmem:[%s1715_s3 + $0x128] sm:$0xff]  ;;  %v408_v17 = vld [vmem:[%s1715_s3 + $0x120] sm:$0xff]  ;;  %v423_v46 = vld [vmem:[%s1715_s3 + $0x198] sm:$0xff] }
  0x24   : > { %443 = vmatprep.subr.mxu0 %v421_v10  ;;  %v405_v18 = vld [vmem:[%s1715_s3 + $0x108] sm:$0xff]  ;;  %v404_v19 = vld [vmem:[%s1715_s3 + $0x100] sm:$0xff]  ;;  %v422_v47 = vld [vmem:[%s1715_s3 + $0x190] sm:$0xff] }
  0x25   : > { %444 = vmatpush1.msra.mxu0 %v420_v11  ;;  %v401_v20 = vld [vmem:[%s1715_s3 + $0xe8] sm:$0xff]  ;;  %v400_v21 = vld [vmem:[%s1715_s3 + $0xe0] sm:$0xff]  ;;  %v419_v48 = vld [vmem:[%s1715_s3 + $0x178] sm:$0xff] }
  0x26   : > { %445 = vmatprep.subr.mxu0 %v417_v12  ;;  %v397_v22 = vld [vmem:[%s1715_s3 + $0xc8] sm:$0xff]  ;;  %v396_v23 = vld [vmem:[%s1715_s3 + $0xc0] sm:$0xff]  ;;  %v418_v49 = vld [vmem:[%s1715_s3 + $0x170] sm:$0xff] }
  0x27   : > { %446 = vmatpush1.msra.mxu0 %v416_v13  ;;  %v393_v24 = vld [vmem:[%s1715_s3 + $0xa8] sm:$0xff]  ;;  %v392_v25 = vld [vmem:[%s1715_s3 + $0xa0] sm:$0xff]  ;;  %v415_v50 = vld [vmem:[%s1715_s3 + $0x158] sm:$0xff] }
  0x28   : > { %447 = vmatprep.subr.mxu0 %v413_v14  ;;  %v389_v26 = vld [vmem:[%s1715_s3 + $0x88] sm:$0xff]  ;;  %v388_v27 = vld [vmem:[%s1715_s3 + $0x80] sm:$0xff]  ;;  %v414_v51 = vld [vmem:[%s1715_s3 + $0x150] sm:$0xff] }
  0x29   : > { %448 = vmatpush1.msra.mxu0 %v412_v15  ;;  %v385_v28 = vld [vmem:[%s1715_s3 + $0x68] sm:$0xff]  ;;  %v368_v29 = vld [vmem:[%s1713_s1] sm:$0xff]  ;;  %v411_v52 = vld [vmem:[%s1715_s3 + $0x138] sm:$0xff] }
  0x2a   : > { %449 = vmatprep.subr.mxu0 %v409_v16  ;;  %v384_v30 = vld [vmem:[%s1715_s3 + $0x60] sm:$0xff]  ;;  %593 = vperm.xlu0 %1124, %v368_v29   ;;  %v381_v31 = vld [vmem:[%s1715_s3 + $0x48] sm:$0xff]  ;;  %v410_v53 = vld [vmem:[%s1715_s3 + $0x130] sm:$0xff] }
  0x2b   : > { %450 = vmatpush1.msra.mxu0 %v408_v17  ;;  %v369_v32 = vld [vmem:[%s1713_s1 + $0x8] sm:$0xff]  ;;  %v380_v33 = vld [vmem:[%s1715_s3 + $0x40] sm:$0xff]  ;;  %v407_v54 = vld [vmem:[%s1715_s3 + $0x118] sm:$0xff] }
  0x2c   : > { %451 = vmatprep.subr.mxu0 %v405_v18  ;;  %v377_v34 = vld [vmem:[%s1715_s3 + $0x28] sm:$0xff]  ;;  %v376_v35 = vld [vmem:[%s1715_s3 + $0x20] sm:$0xff]  ;;  %v406_v55 = vld [vmem:[%s1715_s3 + $0x110] sm:$0xff] }
  0x2d   : > { %452 = vmatpush1.msra.mxu0 %v404_v19  ;;  %v373_v36 = vld [vmem:[%s1715_s3 + $0x8] sm:$0xff]  ;;  %v372_v37 = vld [vmem:[%s1715_s3] sm:$0xff]  ;;  %v403_v56 = vld [vmem:[%s1715_s3 + $0xf8] sm:$0xff] }
  0x2e   : > { %453 = vmatprep.subr.mxu0 %v401_v20  ;;  %598 = vperm.xlu0 %1124, %v369_v32   ;;  %v1352_v38 = vld [vmem:[%s334_s24] sm:$0xff]  ;;  %v1371_v44 = vld [vmem:[%s334_s24 + $0x8] sm:$0xff]  ;;  %s975_s24 = scalar_lea.vmem (%p1232_p5), %s1721_s9, %s1084_s25 }
  0x2f   : > { %454 = vmatpush1.msra.mxu0 %v400_v21  ;;  %v402_v57 = vld [vmem:[%s1715_s3 + $0xf0] sm:$0xff]  ;;  %v399_v58 = vld [vmem:[%s1715_s3 + $0xd8] sm:$0xff]  ;;  %v370_v17 = vld [vmem:[%s1714_s2] sm:$0xff] }
  0x30   : > { %455 = vmatprep.subr.mxu0 %v397_v22  ;;  %v398_v59 = vld [vmem:[%s1715_s3 + $0xd0] sm:$0xff]  ;;  %v395_v60 = vld [vmem:[%s1715_s3 + $0xb8] sm:$0xff]  ;;  %v745_v20 = vld [vmem:[%s1719_s7 + $0xe8] sm:$0xff] }
  0x31   : > { %456 = vmatpush1.msra.mxu0 %v396_v23  ;;  %v394_v61 = vld [vmem:[%s1715_s3 + $0xb0] sm:$0xff]  ;;  %v391_v62 = vld [vmem:[%s1715_s3 + $0x98] sm:$0xff]  ;;  %v744_v21 = vld [vmem:[%s1719_s7 + $0xe0] sm:$0xff] }
  0x32   : > { %457 = vmatprep.subr.mxu0 %v393_v24  ;;  %v390_v63 = vld [vmem:[%s1715_s3 + $0x90] sm:$0xff]  ;;  %v387_v0 = vld [vmem:[%s1715_s3 + $0x78] sm:$0xff]  ;;  %v371_v22 = vld [vmem:[%s1714_s2 + $0x8] sm:$0xff] }
  0x33   : > { %458 = vmatpush1.msra.mxu0 %v392_v25  ;;  %v386_v1 = vld [vmem:[%s1715_s3 + $0x70] sm:$0xff]  ;;  %v383_v2 = vld [vmem:[%s1715_s3 + $0x58] sm:$0xff]  ;;  %v741_v25 = vld [vmem:[%s1719_s7 + $0xc8] sm:$0xff] }
  0x34   : > { %459 = vmatprep.subr.mxu0 %v389_v26  ;;  %v382_v3 = vld [vmem:[%s1715_s3 + $0x50] sm:$0xff]  ;;  %v379_v4 = vld [vmem:[%s1715_s3 + $0x38] sm:$0xff]  ;;  %v736_v29 = vld [vmem:[%s1719_s7 + $0xa0] sm:$0xff] }
  0x35   : > { %460 = vmatpush1.msra.mxu0 %v388_v27  ;;  %v378_v5 = vld [vmem:[%s1715_s3 + $0x30] sm:$0xff]  ;;  %v375_v7 = vld [vmem:[%s1715_s3 + $0x18] sm:$0xff]  ;;  %v733_v32 = vld [vmem:[%s1719_s7 + $0x88] sm:$0xff] }
  0x36   : > { %461 = vmatprep.subr.mxu0 %v385_v28  ;;  %v374_v8 = vld [vmem:[%s1715_s3 + $0x10] sm:$0xff]  ;;  %v747_v18 = vld [vmem:[%s1719_s7 + $0xf8] sm:$0xff]  ;;  %v737_v28 = vld [vmem:[%s1719_s7 + $0xa8] sm:$0xff] }
  0x37   : > { %462 = vmatpush1.msra.mxu0 %v384_v30  ;;  %v746_v19 = vld [vmem:[%s1719_s7 + $0xf0] sm:$0xff]  ;;  %v743_v23 = vld [vmem:[%s1719_s7 + $0xd8] sm:$0xff] }
  0x38   : > { %463 = vmatprep.subr.mxu0 %v381_v31  ;;  %v742_v24 = vld [vmem:[%s1719_s7 + $0xd0] sm:$0xff]  ;;  %v739_v26 = vld [vmem:[%s1719_s7 + $0xb8] sm:$0xff] }
  0x39   : > { %464 = vmatpush1.msra.mxu0 %v380_v33  ;;  %v738_v27 = vld [vmem:[%s1719_s7 + $0xb0] sm:$0xff]  ;;  %v735_v30 = vld [vmem:[%s1719_s7 + $0x98] sm:$0xff]  ;;  %v732_v33 = vld [vmem:[%s1719_s7 + $0x80] sm:$0xff] }
  0x3a   : > { %465 = vmatprep.subr.mxu0 %v377_v34  ;;  %v734_v31 = vld [vmem:[%s1719_s7 + $0x90] sm:$0xff]  ;;  %v731_v34 = vld [vmem:[%s1719_s7 + $0x78] sm:$0xff] }
  0x3b   : > { %466 = vmatpush1.msra.mxu0 %v376_v35  ;;  %v730_v35 = vld [vmem:[%s1719_s7 + $0x70] sm:$0xff] }
  0x3c   : > { %467 = vmatprep.subr.mxu0 %v373_v36  ;;  %v729_v36 = vld [vmem:[%s1719_s7 + $0x68] sm:$0xff] }
  0x3d   : > { %468 = vmatpush1.msra.mxu0 %v372_v37  ;;  %v728_v37 = vld [vmem:[%s1719_s7 + $0x60] sm:$0xff] }
  0x3e   : > { %502 = vmatmul.mubr.f32.vlgmr.msra.gmra.mxu0 %v1352_v38  ;;  %514 = vmatprep.subr.mxu0 %v435_v39  ;;  %v727_v39 = vld [vmem:[%s1719_s7 + $0x58] sm:$0xff] }
  0x3f   : > { %515 = vmatpush1.msra.mxu0 %v434_v40  ;;  %507 = vmatprep.mubr.f32.mxu0 %v1150_v6  ;;  %v726_v40 = vld [vmem:[%s1719_s7 + $0x50] sm:$0xff] }
  0x40   : > { %516 = vmatprep.subr.mxu0 %v431_v41  ;;  %v725_v41 = vld [vmem:[%s1719_s7 + $0x48] sm:$0xff] }
  0x41   : > { %517 = vmatpush1.msra.mxu0 %v430_v42  ;;  %v724_v42 = vld [vmem:[%s1719_s7 + $0x40] sm:$0xff] }
  0x42   : > { %518 = vmatprep.subr.mxu0 %v427_v43  ;;  %508 = vmatmul.mubr.f32.gmra.mxu0 %v1371_v44  ;;  %v723_v43 = vld [vmem:[%s1719_s7 + $0x38] sm:$0xff] }
  0x43   : > { %519 = vmatpush1.msra.mxu0 %v426_v45  ;;  %578 = vmatprep.mubr.f32.mxu0 %v1150_v6  ;;  %v722_v45 = vld [vmem:[%s1719_s7 + $0x30] sm:$0xff] }
  0x44   : > { %520 = vmatprep.subr.mxu0 %v423_v46  ;;  %v721_v46 = vld [vmem:[%s1719_s7 + $0x28] sm:$0xff] }
  0x45   : > { %521 = vmatpush1.msra.mxu0 %v422_v47  ;;  %v720_v47 = vld [vmem:[%s1719_s7 + $0x20] sm:$0xff] }
  0x46   : > { %522 = vmatprep.subr.mxu0 %v419_v48  ;;  %v719_v48 = vld [vmem:[%s1719_s7 + $0x18] sm:$0xff] }
  0x47   : > { %523 = vmatpush1.msra.mxu0 %v418_v49  ;;  %v718_v49 = vld [vmem:[%s1719_s7 + $0x10] sm:$0xff] }
  0x48   : > { %524 = vmatprep.subr.mxu0 %v415_v50  ;;  %v717_v50 = vld [vmem:[%s1719_s7 + $0x8] sm:$0xff] }
  0x49   : > { %525 = vmatpush1.msra.mxu0 %v414_v51  ;;  %v716_v51 = vld [vmem:[%s1719_s7] sm:$0xff] }
  0x4a   : > { %526 = vmatprep.subr.mxu0 %v411_v52  ;;  %v779_v52 = vld [vmem:[%s1719_s7 + $0x1f8] sm:$0xff] }
  0x4b   : > { %527 = vmatpush1.msra.mxu0 %v410_v53  ;;  %v778_v53 = vld [vmem:[%s1719_s7 + $0x1f0] sm:$0xff] }
  0x4c   : > { %528 = vmatprep.subr.mxu0 %v407_v54  ;;  %v777_v54 = vld [vmem:[%s1719_s7 + $0x1e8] sm:$0xff] }
  0x4d   : > { %529 = vmatpush1.msra.mxu0 %v406_v55  ;;  %v776_v55 = vld [vmem:[%s1719_s7 + $0x1e0] sm:$0xff] }
  0x4e   : > { %530 = vmatprep.subr.mxu0 %v403_v56  ;;  %v775_v56 = vld [vmem:[%s1719_s7 + $0x1d8] sm:$0xff] }
  0x4f   : > { %531 = vmatpush1.msra.mxu0 %v402_v57  ;;  %v774_v57 = vld [vmem:[%s1719_s7 + $0x1d0] sm:$0xff] }
  0x50   : > { %532 = vmatprep.subr.mxu0 %v399_v58  ;;  %v773_v58 = vld [vmem:[%s1719_s7 + $0x1c8] sm:$0xff] }
  0x51   : > { %533 = vmatpush1.msra.mxu0 %v398_v59  ;;  %v772_v59 = vld [vmem:[%s1719_s7 + $0x1c0] sm:$0xff] }
  0x52   : > { %534 = vmatprep.subr.mxu0 %v395_v60  ;;  %v771_v60 = vld [vmem:[%s1719_s7 + $0x1b8] sm:$0xff] }
  0x53   : > { %535 = vmatpush1.msra.mxu0 %v394_v61  ;;  %v770_v61 = vld [vmem:[%s1719_s7 + $0x1b0] sm:$0xff] }
  0x54   : > { %536 = vmatprep.subr.mxu0 %v391_v62  ;;  %v769_v62 = vld [vmem:[%s1719_s7 + $0x1a8] sm:$0xff] }
  0x55   : > { %537 = vmatpush1.msra.mxu0 %v390_v63  ;;  %v768_v63 = vld [vmem:[%s1719_s7 + $0x1a0] sm:$0xff] }
  0x56   : > { %538 = vmatprep.subr.mxu0 %v387_v0  ;;  %v767_v0 = vld [vmem:[%s1719_s7 + $0x198] sm:$0xff] }
  0x57   : > { %539 = vmatpush1.msra.mxu0 %v386_v1  ;;  %v766_v1 = vld [vmem:[%s1719_s7 + $0x190] sm:$0xff] }
  0x58   : > { %540 = vmatprep.subr.mxu0 %v383_v2  ;;  %v765_v2 = vld [vmem:[%s1719_s7 + $0x188] sm:$0xff] }
  0x59   : > { %541 = vmatpush1.msra.mxu0 %v382_v3  ;;  %v764_v3 = vld [vmem:[%s1719_s7 + $0x180] sm:$0xff] }
  0x5a   : > { %542 = vmatprep.subr.mxu0 %v379_v4  ;;  %v763_v4 = vld [vmem:[%s1719_s7 + $0x178] sm:$0xff] }
  0x5b   : > { %543 = vmatpush1.msra.mxu0 %v378_v5  ;;  %v762_v5 = vld [vmem:[%s1719_s7 + $0x170] sm:$0xff] }
  0x5c   : > { %544 = vmatprep.subr.mxu0 %v375_v7  ;;  %v761_v7 = vld [vmem:[%s1719_s7 + $0x168] sm:$0xff] }
  0x5d   : > { %545 = vmatpush1.msra.mxu0 %v374_v8  ;;  %v760_v8 = vld [vmem:[%s1719_s7 + $0x160] sm:$0xff] }
  0x5e   : > { %579 = vmatmul.mubr.f32.vlgmr.msra.gmra.mxu0 %v1352_v38 }
  0x5f   : > { %584 = vmatprep.mubr.f32.mxu0 %v1150_v6 }
  0x62   : > { %585 = vmatmul.mubr.f32.gmra.mxu0 %v1371_v44 }
  0xfe   : > { %v1459_v9 = vpop.f32.mrf.mxu0 }
 0x100   : > { %v1461_v10 = vpop.f32.mrf.mxu0 }
 0x102   : > { %v1463_v11 = vpop.f32.mrf.mxu0 }
 0x104   : > { %v1465_v12 = vpop.f32.mrf.mxu0 }
 0x11e   : > { %v580_v13 = vpop.f32.mrf.mxu0 }
 0x120   : > { %v582_v14 = vpop.f32.mrf.mxu0 }
 0x122   : > { %v586_v15 = vpop.f32.mrf.mxu0 }
 0x124   : > { %v588_v16 = vpop.f32.mrf.mxu0 }
 0x125   : > { %640 = vmatprep.subr.mxu1 %v588_v16  ;;  %v756_v16 = vld [vmem:[%s1719_s7 + $0x140] sm:$0xff] }
 0x126   : > { %641 = vmatpush1.msra.mxu1 %v586_v15  ;;  %v757_v15 = vld [vmem:[%s1719_s7 + $0x148] sm:$0xff] }
 0x127   : > { %642 = vmatprep.subr.mxu1 %v582_v14  ;;  %v758_v14 = vld [vmem:[%s1719_s7 + $0x150] sm:$0xff] }
 0x128   : > { %643 = vmatpush1.msra.mxu1 %v580_v13  ;;  %v759_v13 = vld [vmem:[%s1719_s7 + $0x158] sm:$0xff] }
 0x129   : > { %1078 = vmatmul.mubr.msk.f32.vlgmr.msra.gmra.mxu1 %vm605_vm0, %v370_v17  ;;  %781 = vmatprep.subr.mxu1 %v747_v18  ;;  %v755_v17 = vld [vmem:[%s1719_s7 + $0x138] sm:$0xff]  ;;  %v754_v18 = vld [vmem:[%s1719_s7 + $0x130] sm:$0xff] }
 0x12a   : > { %682 = vmatprep.mubr.f32.mxu1 %v1150_v6  ;;  %782 = vmatpush1.msra.mxu1 %v746_v19  ;;  %v740_v6 = vld [vmem:[%s1719_s7 + $0xc0] sm:$0xff]  ;;  %v753_v19 = vld [vmem:[%s1719_s7 + $0x128] sm:$0xff] }
 0x12b   : > { %783 = vmatprep.subr.mxu1 %v745_v20  ;;  %v752_v20 = vld [vmem:[%s1719_s7 + $0x120] sm:$0xff] }
 0x12c   : > { %784 = vmatpush1.msra.mxu1 %v744_v21  ;;  %v751_v21 = vld [vmem:[%s1719_s7 + $0x118] sm:$0xff] }
 0x12d   : > { %1079 = vmatmul.mubr.msk.f32.gmra.mxu1 %vm605_vm0, %v371_v22  ;;  %785 = vmatprep.subr.mxu1 %v743_v23  ;;  %v750_v22 = vld [vmem:[%s1719_s7 + $0x110] sm:$0xff]  ;;  %v749_v23 = vld [vmem:[%s1719_s7 + $0x108] sm:$0xff] }
 0x12e   : > { %786 = vmatpush1.msra.mxu1 %v742_v24  ;;  %v748_v24 = vld [vmem:[%s1719_s7 + $0x100] sm:$0xff] }
 0x12f   : > { %787 = vmatprep.subr.mxu1 %v741_v25  ;;  %v712_v25 = vld [vmem:[%s1717_s5] sm:$0xff] }
 0x130   : > { %788 = vmatpush1.msra.mxu1 %v740_v6  ;;  %860 = vperm.xlu1 %1125, %v712_v25   ;;  %v713_v6 = vld [vmem:[%s1717_s5 + $0x8] sm:$0xff] }
 0x131   : > { %789 = vmatprep.subr.mxu1 %v739_v26  ;;  %v694_v26 = vlaneseq }
 0x132   : > { %790 = vmatpush1.msra.mxu1 %v738_v27 }
 0x133   : > { %791 = vmatprep.subr.mxu1 %v737_v28  ;;  %v695_v27 = vshrl.u32 %v694_v26, 7  ;;  %v594_v28 = vpop.permute.xlu0 %593 }
 0x134   : > { %792 = vmatpush1.msra.mxu1 %v736_v29  ;;  %865 = vperm.xlu1 %1125, %v713_v6  }
 0x135   : > { %793 = vmatprep.subr.mxu1 %v735_v30  ;;  %v696_v29 = vsub.s32 0, %v695_v27  ;;  %v436_v30 = vld [vmem:[%s1716_s4] sm:$0x3] }
 0x136   : > { %794 = vmatpush1.msra.mxu1 %v734_v31  ;;  %v700_v31 = vsub.s32 1, %v695_v27 }
 0x137   : > { %795 = vmatprep.subr.mxu1 %v733_v32  ;;  %v601_v32 = vmul.f32 %v594_v28, %v1459_v9 }
 0x138   : > { %796 = vmatpush1.msra.mxu1 %v732_v33  ;;  %v599_v33 = vpop.permute.xlu0 %598 }
 0x139   : > { %797 = vmatprep.subr.mxu1 %v731_v34 }
 0x13a   : > { %798 = vmatpush1.msra.mxu1 %v730_v35  ;;  %v697_v35 = vrot.slane %v436_v30, %v696_v29 }
 0x13b   : > { %799 = vmatprep.subr.mxu1 %v729_v36  ;;  %v602_v36 = vmul.f32 %v594_v28, %v1461_v10 }
 0x13c   : > { %800 = vmatpush1.msra.mxu1 %v728_v37 }
 0x13d   : > { %801 = vmatprep.subr.mxu1 %v727_v39  ;;  %v701_v39 = vrot.slane %v436_v30, %v700_v31 }
 0x13e   : > { %802 = vmatpush1.msra.mxu1 %v726_v40 }
 0x13f   : > { %803 = vmatprep.subr.mxu1 %v725_v41  ;;  %v603_v41 = vmul.f32 %v599_v33, %v1463_v11  ;;  %v714_v11 = vld [vmem:[%s1718_s6] sm:$0xff] }
 0x140   : > { %804 = vmatpush1.msra.mxu1 %v724_v42  ;;  %1095 = vmatprep.mubr.msk.f32.mxu0 %vm605_vm0, %v714_v11 }
 0x141   : > { %805 = vmatprep.subr.mxu1 %v723_v43 }
 0x142   : > { %806 = vmatpush1.msra.mxu1 %v722_v45 }
 0x143   : > { %807 = vmatprep.subr.mxu1 %v721_v46  ;;  %v604_v46 = vmul.f32 %v599_v33, %v1465_v12 }
 0x144   : > { %808 = vmatpush1.msra.mxu1 %v720_v47 }
 0x145   : > { %809 = vmatprep.subr.mxu1 %v719_v48 }
 0x146   : > { %810 = vmatpush1.msra.mxu1 %v718_v49 }
 0x147   : > { %811 = vmatprep.subr.mxu1 %v717_v50 }
 0x148   : > { %812 = vmatpush1.msra.mxu1 %v716_v51 }
 0x149   : > { %813 = vmatprep.subr.mxu1 %v779_v52 }
 0x14a   : > { %814 = vmatpush2.msra.mxu1 %v778_v53 }
 0x14b   : > { %815 = vmatprep.subr.mxu1 %v777_v54 }
 0x14c   : > { %816 = vmatpush2.msra.mxu1 %v776_v55 }
 0x14d   : > { %817 = vmatprep.subr.mxu1 %v775_v56 }
 0x14e   : > { %818 = vmatpush2.msra.mxu1 %v774_v57 }
 0x14f   : > { %819 = vmatprep.subr.mxu1 %v773_v58  ;;  %v715_v58 = vld [vmem:[%s1718_s6 + $0x8] sm:$0xff] }
 0x150   : > { %820 = vmatpush2.msra.mxu1 %v772_v59 }
 0x151   : > { %821 = vmatprep.subr.mxu1 %v771_v60 }
 0x152   : > { %822 = vmatpush2.msra.mxu1 %v770_v61 }
 0x153   : > { %823 = vmatprep.subr.mxu1 %v769_v62  ;;  %v1082_v62 = vld [vmem:[%s1720_s8] ss:$0 sm:$0xff] }
 0x154   : > { %824 = vmatpush2.msra.mxu1 %v768_v63 }
 0x155   : > { %825 = vmatprep.subr.mxu1 %v767_v0 }
 0x156   : > { %826 = vmatpush2.msra.mxu1 %v766_v1 }
 0x157   : > { %827 = vmatprep.subr.mxu1 %v765_v2 }
 0x158   : > { %828 = vmatpush2.msra.mxu1 %v764_v3 }
 0x159   : > { %829 = vmatprep.subr.mxu1 %v763_v4 }
 0x15a   : > { %830 = vmatpush2.msra.mxu1 %v762_v5 }
 0x15b   : > { %831 = vmatprep.subr.mxu1 %v761_v7 }
 0x15c   : > { %832 = vmatpush2.msra.mxu1 %v760_v8 }
 0x15d   : > { %833 = vmatprep.subr.mxu1 %v759_v13 }
 0x15e   : > { %834 = vmatpush2.msra.mxu1 %v758_v14 }
 0x15f   : > { %835 = vmatprep.subr.mxu1 %v757_v15 }
 0x160   : > { %836 = vmatpush2.msra.mxu1 %v756_v16 }
 0x161   : > { %837 = vmatprep.subr.mxu1 %v755_v17 }
 0x162   : > { %838 = vmatpush2.msra.mxu1 %v754_v18 }
 0x163   : > { %839 = vmatprep.subr.mxu1 %v753_v19 }
 0x164   : > { %840 = vmatpush2.msra.mxu1 %v752_v20 }
 0x165   : > { %841 = vmatprep.subr.mxu1 %v751_v21 }
 0x166   : > { %842 = vmatpush2.msra.mxu1 %v750_v22 }
 0x167   : > { %843 = vmatprep.subr.mxu1 %v749_v23 }
 0x168   : > { %844 = vmatpush2.msra.mxu1 %v748_v24 }
 0x1ab   : > { %v861_v59 = vpop.permute.xlu1 %860 }
 0x1af   : > { %v866_v60 = vpop.permute.xlu1 %865 }
 0x1e9   : > { %v678_v34 = vpop.f32.mrf.mxu1 }
 0x1ea   : > { %v689_v37 = vadd.f32 %v678_v34, %v601_v32 }
 0x1eb   : > { %v680_v40 = vpop.f32.mrf.mxu1 }
 0x1ec   : > { %v690_v42 = vadd.f32 %v680_v40, %v602_v36  ;;  %v704_v43 = vadd.f32 %v697_v35, %v689_v37 }
 0x1ed   : > { %v684_v45 = vpop.f32.mrf.mxu1 }
 0x1ee   : > { %v705_v47 = vadd.f32 %v701_v39, %v690_v42  ;;  %v691_v48 = vadd.f32 %v684_v45, %v603_v41  ;;  %v708_v51 = vmax.f32 %v704_v43, 0.0 }
 0x1ef   : > { %v686_v49 = vpop.f32.mrf.mxu1 }
 0x1f0   : > { %v709_v50 = vmax.f32 %v705_v47, 0.0  ;;  %v692_v9 = vadd.f32 %v686_v49, %v604_v46  ;;  %v706_v52 = vadd.f32 %v697_v35, %v691_v48 }
 0x1f2   : > { %v707_v53 = vadd.f32 %v701_v39, %v692_v9  ;;  %845 = vmatprep.mubr.f32.mxu1 %v709_v50  ;;  %v710_v54 = vmax.f32 %v706_v52, 0.0 }
 0x1f3   : > { %846 = vmatmul.mubr.f32.vlgmr.msra.gmra.mxu1 %v708_v51 }
 0x1f4   : > { %v711_v10 = vmax.f32 %v707_v53, 0.0 }
 0x1f6   : > { %851 = vmatprep.mubr.f32.mxu1 %v711_v10 }
 0x1f7   : > { %852 = vmatmul.mubr.f32.gmra.mxu1 %v710_v54 }
 0x2b3   : > { %v847_v12 = vpop.f32.mrf.mxu1 }
 0x2b4   : > { %v868_v0 = vmul.f32 %v861_v59, %v847_v12 }
 0x2b5   : > { %v849_v55 = vpop.f32.mrf.mxu1 }
 0x2b7   : > { %v853_v56 = vpop.f32.mrf.mxu1 }
 0x2b8   : > { %v869_v61 = vmul.f32 %v866_v60, %v853_v56 }
 0x2b9   : > { %v855_v57 = vpop.f32.mrf.mxu1 }
 0x2ba   : > { %1091 = vmatprep.subr.mxu0 %v855_v57 }
 0x2bb   : > { %1092 = vmatpush3.msra.mxu0 %v855_v57 }
 0x2bc   : > { %1093 = vmatprep.subr.mxu0 %v849_v55 }
 0x2bd   : > { %1094 = vmatpush3.msra.mxu0 %v849_v55 }
 0x2be   : > { %1096 = vmatmul.mubr.msk.f32.vlgmr.msra.gmra.mxu0 %vm605_vm0, %v715_v58 }
 0x37e   : > { %v1097_v63 = vpop.f32.mrf.mxu0 }
 0x37f   : > { %v952_v1 = vadd.f32 %v1097_v63, %v869_v61 }
 0x380   : > { %v942_v2 = vpop.f32.mrf.mxu0 }
 0x381   : > { %v960_v3 = vadd.f32 %v1082_v62, %v952_v1  ;;  %v951_v4 = vadd.f32 %v942_v2, %v868_v0 }
 0x383   : > { %v962_v5 = vmax.f32 %v960_v3, 0.0  ;;  %v959_v7 = vadd.f32 %v1082_v62, %v951_v4 }
 0x385   : > { %v964_v8 = vadd.f32 %v962_v5, %v1371_v44  ;;  %v961_v13 = vmax.f32 %v959_v7, 0.0  ;;  %973 = sbr.rel (!%p1232_p5) target bundleno = 914 (0x392), region = 98 }
 0x387   : > { %966 = vst [vmem:[%s365_s23 + $0x8] sm:$0xff] %v964_v8  ;;  %v963_v14 = vadd.f32 %v961_v13, %v1352_v38 }
 0x389   : > { %965 = vst [vmem:[%s365_s23] sm:$0xff] %v963_v14 }
 0x38e   : > { %v1008_v16 = vld [vmem:[%s365_s23 + $0x8] sm:$0xff] }
 0x38f   : > { %1009 = vst [vmem:[%s975_s24 + $0x10] sm:$0xff] %v1008_v16 }
 0x390   : > { %v1006_v15 = vld [vmem:[%s365_s23] sm:$0xff] }
 0x391   : > { %1007 = vst [vmem:[%s975_s24] sm:$0xff] %v1006_v15 }
 0x392 PF: > { %p16_p10 = scmp.ge.s32.totalorder %s1219_s13, 4   ;;  %s1723_s30 = smov %s1144_s10 }
 0x393   : > { %s1724_s10 = smov %s1230_s16  ;;  %s1725_s11 = smov %s1219_s13 }
 0x394   :  { %18 = sbr.rel (!%p16_p10) target bundleno = 2 (0x2), region = 167 }

</bundles_post_ra>
